<compile_context>
chip_gen: v5e
topology: v5e:2x2
jax: 0.10.0
libtpu: 0.0.40
codegen_flags: <defaults>
</compile_context>

<pallas_src>
import functools
import math

import numpy as np
import jax
import jax.numpy as jnp
from jax.experimental import pallas as pl
from jax.experimental.pallas import tpu as pltpu


# ----------------------------------------------------------------------------
# Pallas kernel: fused multi-layer DCGRU encoder step (one batch element/step)
# ----------------------------------------------------------------------------
def _cheb_cat(adj, z, K):
    """[T0(A)z | T1(A)z | ... | T_{K-1}(A)z] concatenated along lanes.

    adj : (N, N) support
    z   : (N, F)
    returns (N, K*F); column index = k*F + f.
    """
    outs = [z]
    if K > 1:
        z0 = z
        z1 = jnp.dot(adj, z0, preferred_element_type=jnp.float32)
        outs.append(z1)
        for _ in range(2, K):
            z2 = 2.0 * jnp.dot(adj, z1,
                               preferred_element_type=jnp.float32) - z0
            outs.append(z2)
            z0, z1 = z1, z2
    if K == 1:
        return outs[0]
    return jnp.concatenate(outs, axis=-1)


def encoder_kernel(*refs, L, K, U, N):
    """refs = (x, h0, adj, [W_gate, W_cand, bias] * L, out)."""
    x_ref, h0_ref, adj_ref = refs[0], refs[1], refs[2]
    w_refs = refs[3:3 + 3 * L]
    out_ref = refs[3 + 3 * L]

    adj = adj_ref[...]               # (N, N)
    x = x_ref[0]                     # (N, D)

    for l in range(L):
        w_gate = w_refs[3 * l][...]        # (K*F_l, 2U)  -- packed r|u
        w_cand = w_refs[3 * l + 1][...]    # (K*F_l, U)
        bias = w_refs[3 * l + 2][...]      # (1, 3U)      -- packed b_r|b_u|b_c
        h = h0_ref[l, 0]                   # (N, U)

        # ---- gates: sigmoid(gconv([x, h])), fused Chebyshev chain + fused dot
        zg = jnp.concatenate([x, h], axis=-1)              # (N, F_l)
        zg_cat = _cheb_cat(adj, zg, K)                      # (N, K*F_l)
        gates = jax.nn.sigmoid(
            jnp.dot(zg_cat, w_gate, preferred_element_type=jnp.float32)
            + bias[:, :2 * U])
        r = gates[:, :U]
        u = gates[:, U:]

        # ---- candidate: tanh(gconv([x, r*h]))
        zc = jnp.concatenate([x, r * h], axis=-1)           # (N, F_l)
        zc_cat = _cheb_cat(adj, zc, K)                       # (N, K*F_l)
        c = jnp.tanh(
            jnp.dot(zc_cat, w_cand, preferred_element_type=jnp.float32)
            + bias[:, 2 * U:])

        h_new = c + u * (h - c)                              # == u*h + (1-u)*c
        out_ref[l, 0] = h_new                                # (N, U) store
        x = h_new                                            # feeds next layer


# ----------------------------------------------------------------------------
# Parameter prep (glue): canonical (K, F, O) gconv weights -> fused kernel slabs
# ----------------------------------------------------------------------------
def _prep_layer_weights(p, D, U, K):
    """Pack input/state halves and r/u/c into 3 slabs; fold K into contraction."""
    F = D + U
    w_gate = jnp.concatenate([p['w_gate_in'], p['w_gate_st']],
                             axis=1).reshape(K * F, 2 * U)
    w_cand = jnp.concatenate([p['w_cand_in'], p['w_cand_st']],
                             axis=1).reshape(K * F, U)
    bias = jnp.concatenate([p['b_gate'], p['b_cand']], axis=-1)  # (1, 3U)
    return [w_gate, w_cand, bias]


# ----------------------------------------------------------------------------
# Encoder forward (mirrors EncoderModel_1.forward) — single fused pallas_call
# ----------------------------------------------------------------------------
def encoder_forward(inputs, adj, layer_params, hidden_state=None, *,
                    num_nodes, rnn_units, input_dim, max_diffusion_step):
    """inputs: (B, N*input_dim); adj: (N, N)
    returns (output (B, N*U), hidden (num_layers, B, N*U))"""
    B = inputs.shape[0]
    N, U, D = num_nodes, rnn_units, input_dim
    K = max_diffusion_step + 1
    L = len(layer_params)
    if hidden_state is None:
        hidden_state = jnp.zeros((L, B, N * U), jnp.float32)

    # glue: kernel-friendly layouts (metadata-only reshapes)
    x = inputs.reshape(B, N, D)
    h0 = hidden_state.reshape(L, B, N, U)

    weight_args = []
    for l, p in enumerate(layer_params):
        Dl = D if l == 0 else U
        weight_args += _prep_layer_weights(p, Dl, U, K)

    kernel = functools.partial(encoder_kernel, L=L, K=K, U=U, N=N)

    # per-batch-element blocks; adj/weights resident with constant index_map
    in_specs = [
        pl.BlockSpec((1, N, D), lambda b: (b, 0, 0)),       # x
        pl.BlockSpec((L, 1, N, U), lambda b: (0, b, 0, 0)),  # h0
        pl.BlockSpec((N, N), lambda b: (0, 0)),              # adj
    ]
    for l in range(L):
        Fl = (D if l == 0 else U) + U
        in_specs += [
            pl.BlockSpec((K * Fl, 2 * U), lambda b: (0, 0)),  # W_gate
            pl.BlockSpec((K * Fl, U), lambda b: (0, 0)),      # W_cand
            pl.BlockSpec((1, 3 * U), lambda b: (0, 0)),       # bias
        ]
    out_spec = pl.BlockSpec((L, 1, N, U), lambda b: (0, b, 0, 0))

    # advisory cost estimate for the XLA scheduler
    flops = 0
    transcendentals = 0
    for l in range(L):
        Fl = (D if l == 0 else U) + U
        flops += B * (2 * (K - 1) * 2 * N * N * Fl      # two Chebyshev chains
                      + 2 * N * (K * Fl) * (3 * U))     # gate + candidate dots
        transcendentals += B * N * 3 * U
    bytes_accessed = 4 * (x.size + h0.size + adj.size
                          + sum(int(w.size) for w in weight_args)
                          + L * B * N * U)

    hidden = pl.pallas_call(
        kernel,
        out_shape=jax.ShapeDtypeStruct((L, B, N, U), jnp.float32),
        grid=(B,),
        in_specs=in_specs,
        out_specs=out_spec,
        compiler_params=pltpu.CompilerParams(
            dimension_semantics=("parallel",),
            vmem_limit_bytes=32 * 1024 * 1024),
        cost_estimate=pl.CostEstimate(flops=int(flops),
                                      transcendentals=int(transcendentals),
                                      bytes_accessed=int(bytes_accessed)),
    )(x, h0, adj, *weight_args)

    hidden = hidden.reshape(L, B, N * U)   # HBM reshape, metadata-only
    return hidden[-1], hidden


# ----------------------------------------------------------------------------
# Deterministic parameter construction (canonical torch-equivalent layout)
# ----------------------------------------------------------------------------
def make_params(key, *, num_layers, num_nodes, input_dim, rnn_units,
                max_diffusion_step):
    K = max_diffusion_step + 1
    U = rnn_units
    layer_params = []
    for l in range(num_layers):
        d_in = input_dim if l == 0 else rnn_units
        F = d_in + U
        key, kg, kc = jax.random.split(key, 3)
        # weights in (K, F, O) layout (== torch (F*K, O) with order varying fastest)
        w_gate = (jax.random.normal(kg, (K, F, 2 * U), jnp.float32)
                  * (1.0 / math.sqrt(F * K)))
        w_cand = (jax.random.normal(kc, (K, F, U), jnp.float32)
                  * (1.0 / math.sqrt(F * K)))
        layer_params.append(dict(
            w_gate_in=w_gate[:, :d_in, :],
            w_gate_st=w_gate[:, d_in:, :],
            b_gate=jnp.full((1, 2 * U), 1.0, jnp.float32),   # bias_start=1.0
            w_cand_in=w_cand[:, :d_in, :],
            w_cand_st=w_cand[:, d_in:, :],
            b_cand=jnp.zeros((1, U), jnp.float32),            # bias_start=0.0
        ))
    return layer_params


# ----------------------------------------------------------------------------
# Pure-JAX reference mirroring the PyTorch DCGRUCell code path exactly
# ----------------------------------------------------------------------------
def _gconv_ref(inputs, state, adj, w_kfo, bias, K, N):
    B = inputs.shape[0]
    x = jnp.concatenate([inputs.reshape(B, N, -1), state.reshape(B, N, -1)],
                        axis=2)
    F = x.shape[2]
    x0 = x.transpose(1, 2, 0).reshape(N, F * B)
    xs = [x0]
    if K > 1:
        x1 = adj @ x0
        xs.append(x1)
        for _ in range(2, K):
            x2 = 2.0 * (adj @ x1) - x0
            xs.append(x2)
            x1, x0 = x2, x1
    xcat = jnp.stack(xs, 0).reshape(K, N, F, B).transpose(3, 1, 2, 0)
    xcat = xcat.reshape(B * N, F * K)
    w_torch = w_kfo.transpose(1, 0, 2).reshape(F * K, -1)  # (F*K, O)
    out = xcat @ w_torch + bias.reshape(-1)
    O = w_torch.shape[-1]
    return out.reshape(B, N * O)


def _cell_ref(x_flat, h_flat, adj, p, K, N, U):
    wg = jnp.concatenate([p['w_gate_in'], p['w_gate_st']], axis=1)
    wc = jnp.concatenate([p['w_cand_in'], p['w_cand_st']], axis=1)
    gates = jax.nn.sigmoid(_gconv_ref(x_flat, h_flat, adj, wg, p['b_gate'],
                                      K, N)).reshape(-1, N, 2 * U)
    r = gates[..., :U].reshape(-1, N * U)
    u = gates[..., U:].reshape(-1, N * U)
    c = jnp.tanh(_gconv_ref(x_flat, r * h_flat, adj, wc, p['b_cand'], K, N))
    return u * h_flat + (1.0 - u) * c


def encoder_ref(inputs, adj, layer_params, hidden_state=None, *, num_nodes,
                rnn_units, max_diffusion_step):
    B = inputs.shape[0]
    K = max_diffusion_step + 1
    L = len(layer_params)
    if hidden_state is None:
        hidden_state = jnp.zeros((L, B, num_nodes * rnn_units), jnp.float32)
    output = inputs
    hs = []
    for l, p in enumerate(layer_params):
        h_new = _cell_ref(output, hidden_state[l], adj, p, K, num_nodes,
                          rnn_units)
        hs.append(h_new)
        output = h_new
    return output, jnp.stack(hs)


# ----------------------------------------------------------------------------
if __name__ == "__main__":
    # Model hyper-parameters (small, consistent with the module's __init__).
    num_nodes = 8
    input_dim = 4
    rnn_units = 16
    max_diffusion_step = 2
    num_rnn_layers = 2
    seq_len = 8          # stored by the module, unused in a single forward step
    batch = 4

    key = jax.random.PRNGKey(0)
    key, k_in, k_adj, k_h = jax.random.split(key, 4)

    inputs = jax.random.normal(k_in, (batch, num_nodes * input_dim),
                               jnp.float32)
    # random (row-normalized-ish) adjacency / support matrix
    adj = jax.random.uniform(k_adj, (num_nodes, num_nodes), jnp.float32)
    adj = adj / jnp.sum(adj, axis=1, keepdims=True)

    layer_params = make_params(
        key, num_layers=num_rnn_layers, num_nodes=num_nodes,
        input_dim=input_dim, rnn_units=rnn_units,
        max_diffusion_step=max_diffusion_step)

    kwargs = dict(num_nodes=num_nodes, rnn_units=rnn_units,
                  input_dim=input_dim, max_diffusion_step=max_diffusion_step)

    # --- test 1: default zero-initialized hidden state -----------------------
    output, hidden = encoder_forward(inputs, adj, layer_params, **kwargs)
    output = jax.block_until_ready(output)
    hidden = jax.block_until_ready(hidden)

    out_ref, hid_ref = encoder_ref(
        inputs, adj, layer_params, num_nodes=num_nodes, rnn_units=rnn_units,
        max_diffusion_step=max_diffusion_step)
    np.testing.assert_allclose(np.asarray(output), np.asarray(out_ref),
                               rtol=1e-3, atol=1e-3)
    np.testing.assert_allclose(np.asarray(hidden), np.asarray(hid_ref),
                               rtol=1e-3, atol=1e-3)

    # --- test 2: explicit non-zero hidden state (exercises that code path) ---
    h_init = 0.1 * jax.random.normal(
        k_h, (num_rnn_layers, batch, num_nodes * rnn_units), jnp.float32)
    output2, hidden2 = encoder_forward(inputs, adj, layer_params, h_init,
                                       **kwargs)
    output2 = jax.block_until_ready(output2)
    hidden2 = jax.block_until_ready(hidden2)
    out_ref2, hid_ref2 = encoder_ref(
        inputs, adj, layer_params, h_init, num_nodes=num_nodes,
        rnn_units=rnn_units, max_diffusion_step=max_diffusion_step)
    np.testing.assert_allclose(np.asarray(output2), np.asarray(out_ref2),
                               rtol=1e-3, atol=1e-3)
    np.testing.assert_allclose(np.asarray(hidden2), np.asarray(hid_ref2),
                               rtol=1e-3, atol=1e-3)

    assert output.shape == (batch, num_nodes * rnn_units)
    assert hidden.shape == (num_rnn_layers, batch, num_nodes * rnn_units)
    print("KERNEL_OK")
</pallas_src>

<mosaic_0001>
module attributes {stable_mosaic.version = 11 : i64} {
  func.func @encoder_kernel(%arg0: i32, %arg1: memref<1x8x4xf32, #tpu.memory_space<vmem>>, %arg2: memref<2x1x8x16xf32, #tpu.memory_space<vmem>>, %arg3: memref<8x8xf32, #tpu.memory_space<vmem>>, %arg4: memref<60x32xf32, #tpu.memory_space<vmem>>, %arg5: memref<60x16xf32, #tpu.memory_space<vmem>>, %arg6: memref<1x48xf32, #tpu.memory_space<vmem>>, %arg7: memref<96x32xf32, #tpu.memory_space<vmem>>, %arg8: memref<96x16xf32, #tpu.memory_space<vmem>>, %arg9: memref<1x48xf32, #tpu.memory_space<vmem>>, %arg10: memref<2x1x8x16xf32, #tpu.memory_space<vmem>>) attributes {dimension_semantics = [#tpu.dimension_semantics<parallel>], iteration_bounds = array<i64: 4>, scalar_prefetch = 0 : i64, scratch_operands = 0 : i64, tpu.core_type = #tpu.core_type<tc>, window_params = [{transform_indices = @transform_0, window_bounds = array<i64: 1, 8, 4>}, {transform_indices = @transform_1, window_bounds = array<i64: 2, 1, 8, 16>}, {pipeline_mode = #tpu.pipeline_mode<synchronous>, transform_indices = @transform_2, window_bounds = array<i64: 8, 8>}, {pipeline_mode = #tpu.pipeline_mode<synchronous>, transform_indices = @transform_3, window_bounds = array<i64: 60, 32>}, {pipeline_mode = #tpu.pipeline_mode<synchronous>, transform_indices = @transform_4, window_bounds = array<i64: 60, 16>}, {pipeline_mode = #tpu.pipeline_mode<synchronous>, transform_indices = @transform_5, window_bounds = array<i64: 1, 48>}, {pipeline_mode = #tpu.pipeline_mode<synchronous>, transform_indices = @transform_6, window_bounds = array<i64: 96, 32>}, {pipeline_mode = #tpu.pipeline_mode<synchronous>, transform_indices = @transform_7, window_bounds = array<i64: 96, 16>}, {pipeline_mode = #tpu.pipeline_mode<synchronous>, transform_indices = @transform_8, window_bounds = array<i64: 1, 48>}, {transform_indices = @transform_9, window_bounds = array<i64: 2, 1, 8, 16>}]} {
    %c0 = arith.constant 0 : index
    %c0_0 = arith.constant 0 : index
    %0 = vector.load %arg3[%c0, %c0_0] : memref<8x8xf32, #tpu.memory_space<vmem>>, vector<8x8xf32>
    %c0_1 = arith.constant 0 : index
    %c0_2 = arith.constant 0 : index
    %c0_3 = arith.constant 0 : index
    %1 = vector.load %arg1[%c0_1, %c0_2, %c0_3] : memref<1x8x4xf32, #tpu.memory_space<vmem>>, vector<1x8x4xf32>
    %2 = vector.shape_cast %1 : vector<1x8x4xf32> to vector<8x4xf32>
    %c0_4 = arith.constant 0 : index
    %c0_5 = arith.constant 0 : index
    %3 = vector.load %arg4[%c0_4, %c0_5] : memref<60x32xf32, #tpu.memory_space<vmem>>, vector<60x32xf32>
    %c0_6 = arith.constant 0 : index
    %c0_7 = arith.constant 0 : index
    %4 = vector.load %arg5[%c0_6, %c0_7] : memref<60x16xf32, #tpu.memory_space<vmem>>, vector<60x16xf32>
    %c0_8 = arith.constant 0 : index
    %c0_9 = arith.constant 0 : index
    %5 = vector.load %arg6[%c0_8, %c0_9] : memref<1x48xf32, #tpu.memory_space<vmem>>, vector<1x48xf32>
    %c0_10 = arith.constant 0 : index
    %c0_11 = arith.constant 0 : index
    %c0_12 = arith.constant 0 : index
    %c0_13 = arith.constant 0 : index
    %6 = vector.load %arg2[%c0_10, %c0_11, %c0_12, %c0_13] : memref<2x1x8x16xf32, #tpu.memory_space<vmem>>, vector<1x1x8x16xf32>
    %7 = vector.shape_cast %6 : vector<1x1x8x16xf32> to vector<8x16xf32>
    %8 = tpu.concatenate %2, %7 in 1 : vector<8x4xf32>, vector<8x16xf32> -> vector<8x20xf32>
    %cst = arith.constant dense<0.000000e+00> : vector<8x20xf32>
    %9 = tpu.matmul %0, %8, %cst {dimension_numbers = #tpu.dot_dimension_numbers<[1], [0], [0], [1], [0, 0, 1, 1], [], []>} : vector<8x8xf32>, vector<8x20xf32>, vector<8x20xf32> -> vector<8x20xf32>
    %cst_14 = arith.constant dense<0.000000e+00> : vector<8x20xf32>
    %10 = tpu.matmul %0, %9, %cst_14 {dimension_numbers = #tpu.dot_dimension_numbers<[1], [0], [0], [1], [0, 0, 1, 1], [], []>} : vector<8x8xf32>, vector<8x20xf32>, vector<8x20xf32> -> vector<8x20xf32>
    %cst_15 = arith.constant 2.000000e+00 : f32
    %11 = vector.broadcast %cst_15 : f32 to vector<8x20xf32>
    %12 = arith.mulf %11, %10 : vector<8x20xf32>
    %13 = arith.subf %12, %8 : vector<8x20xf32>
    %14 = tpu.concatenate %8, %9, %13 in 1 : vector<8x20xf32>, vector<8x20xf32>, vector<8x20xf32> -> vector<8x60xf32>
    %cst_16 = arith.constant dense<0.000000e+00> : vector<8x32xf32>
    %15 = tpu.matmul %14, %3, %cst_16 {dimension_numbers = #tpu.dot_dimension_numbers<[1], [0], [0], [1], [0, 0, 1, 1], [], []>} : vector<8x60xf32>, vector<60x32xf32>, vector<8x32xf32> -> vector<8x32xf32>
    %16 = vector.extract_strided_slice %5 {offsets = [0, 0], sizes = [1, 32], strides = [1, 1]} : vector<1x48xf32> to vector<1x32xf32>
    %17 = vector.broadcast %16 : vector<1x32xf32> to vector<8x32xf32>
    %18 = arith.addf %15, %17 : vector<8x32xf32>
    %19 = arith.negf %18 : vector<8x32xf32>
    %20 = math.exp %19 : vector<8x32xf32>
    %cst_17 = arith.constant 1.000000e+00 : f32
    %21 = vector.broadcast %cst_17 : f32 to vector<8x32xf32>
    %22 = arith.addf %21, %20 : vector<8x32xf32>
    %23 = arith.divf %21, %22 : vector<8x32xf32>
    %24 = vector.extract_strided_slice %23 {offsets = [0, 0], sizes = [8, 16], strides = [1, 1]} : vector<8x32xf32> to vector<8x16xf32>
    %25 = vector.extract_strided_slice %23 {offsets = [0, 16], sizes = [8, 16], strides = [1, 1]} : vector<8x32xf32> to vector<8x16xf32>
    %26 = arith.mulf %24, %7 : vector<8x16xf32>
    %27 = tpu.concatenate %2, %26 in 1 : vector<8x4xf32>, vector<8x16xf32> -> vector<8x20xf32>
    %cst_18 = arith.constant dense<0.000000e+00> : vector<8x20xf32>
    %28 = tpu.matmul %0, %27, %cst_18 {dimension_numbers = #tpu.dot_dimension_numbers<[1], [0], [0], [1], [0, 0, 1, 1], [], []>} : vector<8x8xf32>, vector<8x20xf32>, vector<8x20xf32> -> vector<8x20xf32>
    %cst_19 = arith.constant dense<0.000000e+00> : vector<8x20xf32>
    %29 = tpu.matmul %0, %28, %cst_19 {dimension_numbers = #tpu.dot_dimension_numbers<[1], [0], [0], [1], [0, 0, 1, 1], [], []>} : vector<8x8xf32>, vector<8x20xf32>, vector<8x20xf32> -> vector<8x20xf32>
    %cst_20 = arith.constant 2.000000e+00 : f32
    %30 = vector.broadcast %cst_20 : f32 to vector<8x20xf32>
    %31 = arith.mulf %30, %29 : vector<8x20xf32>
    %32 = arith.subf %31, %27 : vector<8x20xf32>
    %33 = tpu.concatenate %27, %28, %32 in 1 : vector<8x20xf32>, vector<8x20xf32>, vector<8x20xf32> -> vector<8x60xf32>
    %cst_21 = arith.constant dense<0.000000e+00> : vector<8x16xf32>
    %34 = tpu.matmul %33, %4, %cst_21 {dimension_numbers = #tpu.dot_dimension_numbers<[1], [0], [0], [1], [0, 0, 1, 1], [], []>} : vector<8x60xf32>, vector<60x16xf32>, vector<8x16xf32> -> vector<8x16xf32>
    %35 = vector.extract_strided_slice %5 {offsets = [0, 32], sizes = [1, 16], strides = [1, 1]} : vector<1x48xf32> to vector<1x16xf32>
    %36 = vector.broadcast %35 : vector<1x16xf32> to vector<8x16xf32>
    %37 = arith.addf %34, %36 : vector<8x16xf32>
    %38 = math.tanh %37 : vector<8x16xf32>
    %39 = arith.subf %7, %38 : vector<8x16xf32>
    %40 = arith.mulf %25, %39 : vector<8x16xf32>
    %41 = arith.addf %38, %40 : vector<8x16xf32>
    %c0_22 = arith.constant 0 : index
    %c0_23 = arith.constant 0 : index
    %c0_24 = arith.constant 0 : index
    %c0_25 = arith.constant 0 : index
    %42 = vector.load %arg10[%c0_22, %c0_23, %c0_24, %c0_25] : memref<2x1x8x16xf32, #tpu.memory_space<vmem>>, vector<1x1x8x16xf32>
    %43 = vector.shape_cast %42 : vector<1x1x8x16xf32> to vector<8x16xf32>
    %44 = vector.shape_cast %41 : vector<8x16xf32> to vector<1x1x8x16xf32>
    tpu.vector_store %arg10[%c0_22, %c0_23, %c0_24, %c0_25], %44 {strides = array<i32>} : memref<2x1x8x16xf32, #tpu.memory_space<vmem>>, vector<1x1x8x16xf32>,
    %c0_26 = arith.constant 0 : index
    %c0_27 = arith.constant 0 : index
    %45 = vector.load %arg7[%c0_26, %c0_27] : memref<96x32xf32, #tpu.memory_space<vmem>>, vector<96x32xf32>
    %c0_28 = arith.constant 0 : index
    %c0_29 = arith.constant 0 : index
    %46 = vector.load %arg8[%c0_28, %c0_29] : memref<96x16xf32, #tpu.memory_space<vmem>>, vector<96x16xf32>
    %c0_30 = arith.constant 0 : index
    %c0_31 = arith.constant 0 : index
    %47 = vector.load %arg9[%c0_30, %c0_31] : memref<1x48xf32, #tpu.memory_space<vmem>>, vector<1x48xf32>
    %c1 = arith.constant 1 : index
    %c0_32 = arith.constant 0 : index
    %c0_33 = arith.constant 0 : index
    %c0_34 = arith.constant 0 : index
    %48 = vector.load %arg2[%c1, %c0_32, %c0_33, %c0_34] : memref<2x1x8x16xf32, #tpu.memory_space<vmem>>, vector<1x1x8x16xf32>
    %49 = vector.shape_cast %48 : vector<1x1x8x16xf32> to vector<8x16xf32>
    %50 = tpu.concatenate %41, %49 in 1 : vector<8x16xf32>, vector<8x16xf32> -> vector<8x32xf32>
    %cst_35 = arith.constant dense<0.000000e+00> : vector<8x32xf32>
    %51 = tpu.matmul %0, %50, %cst_35 {dimension_numbers = #tpu.dot_dimension_numbers<[1], [0], [0], [1], [0, 0, 1, 1], [], []>} : vector<8x8xf32>, vector<8x32xf32>, vector<8x32xf32> -> vector<8x32xf32>
    %cst_36 = arith.constant dense<0.000000e+00> : vector<8x32xf32>
    %52 = tpu.matmul %0, %51, %cst_36 {dimension_numbers = #tpu.dot_dimension_numbers<[1], [0], [0], [1], [0, 0, 1, 1], [], []>} : vector<8x8xf32>, vector<8x32xf32>, vector<8x32xf32> -> vector<8x32xf32>
    %cst_37 = arith.constant 2.000000e+00 : f32
    %53 = vector.broadcast %cst_37 : f32 to vector<8x32xf32>
    %54 = arith.mulf %53, %52 : vector<8x32xf32>
    %55 = arith.subf %54, %50 : vector<8x32xf32>
    %56 = tpu.concatenate %50, %51, %55 in 1 : vector<8x32xf32>, vector<8x32xf32>, vector<8x32xf32> -> vector<8x96xf32>
    %cst_38 = arith.constant dense<0.000000e+00> : vector<8x32xf32>
    %57 = tpu.matmul %56, %45, %cst_38 {dimension_numbers = #tpu.dot_dimension_numbers<[1], [0], [0], [1], [0, 0, 1, 1], [], []>} : vector<8x96xf32>, vector<96x32xf32>, vector<8x32xf32> -> vector<8x32xf32>
    %58 = vector.extract_strided_slice %47 {offsets = [0, 0], sizes = [1, 32], strides = [1, 1]} : vector<1x48xf32> to vector<1x32xf32>
    %59 = vector.broadcast %58 : vector<1x32xf32> to vector<8x32xf32>
    %60 = arith.addf %57, %59 : vector<8x32xf32>
    %61 = arith.negf %60 : vector<8x32xf32>
    %62 = math.exp %61 : vector<8x32xf32>
    %cst_39 = arith.constant 1.000000e+00 : f32
    %63 = vector.broadcast %cst_39 : f32 to vector<8x32xf32>
    %64 = arith.addf %63, %62 : vector<8x32xf32>
    %65 = arith.divf %63, %64 : vector<8x32xf32>
    %66 = vector.extract_strided_slice %65 {offsets = [0, 0], sizes = [8, 16], strides = [1, 1]} : vector<8x32xf32> to vector<8x16xf32>
    %67 = vector.extract_strided_slice %65 {offsets = [0, 16], sizes = [8, 16], strides = [1, 1]} : vector<8x32xf32> to vector<8x16xf32>
    %68 = arith.mulf %66, %49 : vector<8x16xf32>
    %69 = tpu.concatenate %41, %68 in 1 : vector<8x16xf32>, vector<8x16xf32> -> vector<8x32xf32>
    %cst_40 = arith.constant dense<0.000000e+00> : vector<8x32xf32>
    %70 = tpu.matmul %0, %69, %cst_40 {dimension_numbers = #tpu.dot_dimension_numbers<[1], [0], [0], [1], [0, 0, 1, 1], [], []>} : vector<8x8xf32>, vector<8x32xf32>, vector<8x32xf32> -> vector<8x32xf32>
    %cst_41 = arith.constant dense<0.000000e+00> : vector<8x32xf32>
    %71 = tpu.matmul %0, %70, %cst_41 {dimension_numbers = #tpu.dot_dimension_numbers<[1], [0], [0], [1], [0, 0, 1, 1], [], []>} : vector<8x8xf32>, vector<8x32xf32>, vector<8x32xf32> -> vector<8x32xf32>
    %cst_42 = arith.constant 2.000000e+00 : f32
    %72 = vector.broadcast %cst_42 : f32 to vector<8x32xf32>
    %73 = arith.mulf %72, %71 : vector<8x32xf32>
    %74 = arith.subf %73, %69 : vector<8x32xf32>
    %75 = tpu.concatenate %69, %70, %74 in 1 : vector<8x32xf32>, vector<8x32xf32>, vector<8x32xf32> -> vector<8x96xf32>
    %cst_43 = arith.constant dense<0.000000e+00> : vector<8x16xf32>
    %76 = tpu.matmul %75, %46, %cst_43 {dimension_numbers = #tpu.dot_dimension_numbers<[1], [0], [0], [1], [0, 0, 1, 1], [], []>} : vector<8x96xf32>, vector<96x16xf32>, vector<8x16xf32> -> vector<8x16xf32>
    %77 = vector.extract_strided_slice %47 {offsets = [0, 32], sizes = [1, 16], strides = [1, 1]} : vector<1x48xf32> to vector<1x16xf32>
    %78 = vector.broadcast %77 : vector<1x16xf32> to vector<8x16xf32>
    %79 = arith.addf %76, %78 : vector<8x16xf32>
    %80 = math.tanh %79 : vector<8x16xf32>
    %81 = arith.subf %49, %80 : vector<8x16xf32>
    %82 = arith.mulf %67, %81 : vector<8x16xf32>
    %83 = arith.addf %80, %82 : vector<8x16xf32>
    %c1_44 = arith.constant 1 : index
    %c0_45 = arith.constant 0 : index
    %c0_46 = arith.constant 0 : index
    %c0_47 = arith.constant 0 : index
    %84 = vector.load %arg10[%c1_44, %c0_45, %c0_46, %c0_47] : memref<2x1x8x16xf32, #tpu.memory_space<vmem>>, vector<1x1x8x16xf32>
    %85 = vector.shape_cast %84 : vector<1x1x8x16xf32> to vector<8x16xf32>
    %86 = vector.shape_cast %83 : vector<8x16xf32> to vector<1x1x8x16xf32>
    tpu.vector_store %arg10[%c1_44, %c0_45, %c0_46, %c0_47], %86 {strides = array<i32>} : memref<2x1x8x16xf32, #tpu.memory_space<vmem>>, vector<1x1x8x16xf32>,
    return
  }
  func.func @transform_0(%arg0: i32) -> (i32, i32, i32) {
    %c0_i32 = arith.constant 0 : i32
    %c0_i32_0 = arith.constant 0 : i32
    %c0_i32_1 = arith.constant 0 : i32
    return %arg0, %c0_i32, %c0_i32_0 : i32, i32, i32
  }
  func.func @transform_1(%arg0: i32) -> (i32, i32, i32, i32) {
    %c0_i32 = arith.constant 0 : i32
    %c0_i32_0 = arith.constant 0 : i32
    %c0_i32_1 = arith.constant 0 : i32
    %c0_i32_2 = arith.constant 0 : i32
    return %c0_i32, %arg0, %c0_i32_0, %c0_i32_1 : i32, i32, i32, i32
  }
  func.func @transform_2(%arg0: i32) -> (i32, i32) {
    %c0_i32 = arith.constant 0 : i32
    %c0_i32_0 = arith.constant 0 : i32
    %c0_i32_1 = arith.constant 0 : i32
    return %c0_i32, %c0_i32_0 : i32, i32
  }
  func.func @transform_3(%arg0: i32) -> (i32, i32) {
    %c0_i32 = arith.constant 0 : i32
    %c0_i32_0 = arith.constant 0 : i32
    %c0_i32_1 = arith.constant 0 : i32
    return %c0_i32, %c0_i32_0 : i32, i32
  }
  func.func @transform_4(%arg0: i32) -> (i32, i32) {
    %c0_i32 = arith.constant 0 : i32
    %c0_i32_0 = arith.constant 0 : i32
    %c0_i32_1 = arith.constant 0 : i32
    return %c0_i32, %c0_i32_0 : i32, i32
  }
  func.func @transform_5(%arg0: i32) -> (i32, i32) {
    %c0_i32 = arith.constant 0 : i32
    %c0_i32_0 = arith.constant 0 : i32
    %c0_i32_1 = arith.constant 0 : i32
    return %c0_i32, %c0_i32_0 : i32, i32
  }
  func.func @transform_6(%arg0: i32) -> (i32, i32) {
    %c0_i32 = arith.constant 0 : i32
    %c0_i32_0 = arith.constant 0 : i32
    %c0_i32_1 = arith.constant 0 : i32
    return %c0_i32, %c0_i32_0 : i32, i32
  }
  func.func @transform_7(%arg0: i32) -> (i32, i32) {
    %c0_i32 = arith.constant 0 : i32
    %c0_i32_0 = arith.constant 0 : i32
    %c0_i32_1 = arith.constant 0 : i32
    return %c0_i32, %c0_i32_0 : i32, i32
  }
  func.func @transform_8(%arg0: i32) -> (i32, i32) {
    %c0_i32 = arith.constant 0 : i32
    %c0_i32_0 = arith.constant 0 : i32
    %c0_i32_1 = arith.constant 0 : i32
    return %c0_i32, %c0_i32_0 : i32, i32
  }
  func.func @transform_9(%arg0: i32) -> (i32, i32, i32, i32) {
    %c0_i32 = arith.constant 0 : i32
    %c0_i32_0 = arith.constant 0 : i32
    %c0_i32_1 = arith.constant 0 : i32
    %c0_i32_2 = arith.constant 0 : i32
    return %c0_i32, %arg0, %c0_i32_0, %c0_i32_1 : i32, i32, i32, i32
  }
}

</mosaic_0001>

<bundles_post_ra>
// kernel: tpu_custom_call.1
= control target key start
LH: loop header
LB: loop body
LE: loop exit
PB: predicated region body
PF: predicated region fallthrough
CT: control target
= control target key end

     0   :  { %14 = vsyncpa [#allocation4], 0  ;;  %s1480_s0 = inlined_call_operand.vmem [shape: f32[4,8,4], index: 0, kind: input, shape index: {}]   ;;  %s1481_s1 = inlined_call_operand.vmem [shape: f32[2,4,8,16], index: 1, kind: input, shape index: {}]   ;;  %s1482_s2 = inlined_call_operand.vmem [shape: f32[8,8], index: 2, kind: input, shape index: {}]   ;;  %s1483_s3 = inlined_call_operand.vmem [shape: f32[60,32], index: 3, kind: input, shape index: {}]   ;;  %s1484_s4 = inlined_call_operand.vmem [shape: f32[60,16], index: 4, kind: input, shape index: {}]   ;;  %s1485_s5 = inlined_call_operand.vmem [shape: f32[1,48], index: 5, kind: input, shape index: {}]   ;;  %s1486_s6 = inlined_call_operand.vmem [shape: f32[96,32], index: 6, kind: input, shape index: {}]   ;;  %s1487_s7 = inlined_call_operand.vmem [shape: f32[96,16], index: 7, kind: input, shape index: {}]   ;;  %s1488_s8 = inlined_call_operand.vmem [shape: f32[1,48], index: 8, kind: input, shape index: {}]   ;;  %s1489_s9 = inlined_call_operand.hbm [shape: f32[2,4,8,16], index: 9, kind: output, shape index: {}]  }
   0x1   :  { %16 = vsyncpa [#allocation4 + $0x1], 0  ;;  %s1167_s30 = smov 0   ;;  %s1169_s10 = smov 0  }
   0x2   :  { %s1171_s11 = smov 0   ;;  %s1173_s12 = smov 0  }
   0x3 LB: > { %s1188_s13 = sadd.s32 4294967295, %s1104_s12   ;;  %s947_s14 = sadd.s32 4294967294, %s1104_s12   ;;  %s1104_s12 = sphi %s1173_s12, %s1509_s12   ;;  %s1100_s11 = sphi %s1171_s11, %s1508_s11   ;;  %s1096_s10 = sphi %s1169_s10, %s1507_s10   ;;  %s1092_s30 = sphi %s1167_s30, %s1506_s30  }
   0x4   : > { %s1192_s15 = sadd.s32 1, %s1104_s12   ;;  %s55_s16 = sadd.s32 1, %s1100_s11 }
   0x5   : > { %s52_s17 = ssub.s32 %s1104_s12, %s1192_s15  ;;  %p62_p0 = scmp.ne.s32.totalorder %s1100_s11, %s1096_s10 }
   0x6   : > { %p53_p1 = scmp.eq.s32.totalorder %s52_s17, 0  ;;  %p63_p2 = scmp.eq.s32.totalorder %s1104_s12, 0 }
   0x7   : > { %p239_p3 = scmp.eq.s32.totalorder %s1188_s13, 3  ;;  %p244_p4 = scmp.ne.s32.totalorder %s1096_s10, %s1092_s30 }
   0x8   : > { %s1204_s18 = scalar_select %p53_p1, %s1100_s11, %s55_s16  }
   0x9   : > { %p64_p5 = por %p63_p2, %p62_p0  ;;  %p1206_p6 = por %p239_p3, %p62_p0 }
   0xa   : > { %p245_p7 = scmp.eq.s32.totalorder %s947_s14, 3  ;;  %p949_p9 = scmp.ge.s32.totalorder %s1104_s12, 4 }
   0xc   : > { %p1210_p8 = por %p245_p7, %p244_p4  ;;  %282 = sbr.rel (%p949_p9) target bundleno = 23 (0x17), region = 44 }
  0x11   : > { %292 = sbr.rel (!%p64_p5) target bundleno = 23 (0x17), region = 52  ;;  %s294_s21 = sand.u32 (%p64_p5), 1, %s1100_s11  }
  0x12   : > { %s951_s22 = sshll.u32 (%p64_p5), %s1104_s12, 3  ;;  %s950_s23 = sshll.u32 (%p64_p5), %s294_s21, 4 }
  0x13   : > { %s298_s26 = scalar_lea.vmem (%p64_p5), %s1481_s1, %s951_s22  ;;  %s296_s27 = scalar_lea.vmem (%p64_p5), [#allocation2], %s950_s23 }
  0x14   : > { %v329_v0 = vld [vmem:[%s298_s26] sm:$0xff] (%p64_p5) }
  0x15   : > { %v331_v1 = vld [vmem:[%s298_s26 + $0x20] sm:$0xff] (%p64_p5)  ;;  %330 = vst [vmem:[%s296_s27] sm:$0xff] (%p64_p5), %v329_v0 }
  0x16   : > { %332 = vst [vmem:[%s296_s27 + $0x8] sm:$0xff] %v331_v1 }
  0x17 PF: > { %p952_p10 = scmp.ge.s32.totalorder %s1104_s12, 1  ;;  %p337_p11 = scmp.lt.s32.totalorder %s1104_s12, 5 }
  0x19   : > { %p338_p12 = pnand %p952_p10, %p337_p11 }
  0x1a   : > { %s1490_s28 = sand.u32 (!%p338_p12), 1, %s1096_s10   ;;  %s1106_s16 = smov (!%p338_p12), 4  }
  0x1b   : > { %341 = sbr.rel (%p338_p12) target bundleno = 2857 (0xb29), region = 90  ;;  %s1225_s29 = sshll.u32 (!%p338_p12), %s1490_s28, 4 }
  0x1c   : > { %s1491_s14 = scalar_lea.vmem (!%p338_p12), [#allocation2], %s1225_s29  ;;  %p383_p13 = scmp.lt.s32.totalorder (!%p338_p12), %s1188_s13, 3 }
  0x1d   : > { %s1492_s27 = smov (!%p338_p12), 20   ;;  %s1108_s28 = smov (!%p338_p12), 40  }
  0x1e   : > { %s1499_s26 = smov (!%p338_p12), 20   ;;  %s1336_s25 = scalar_lea.vmem (!%p338_p12), [#allocation3], %s1225_s29 }
  0x1f   : > { %s1504_s23 = smov (!%p338_p12), 112  }
  0x20   : > { %v1230_v2 = vld [vmem:[%s1491_s14] sm:$0xff]  ;;  %s384_s17 = scalar_select %p383_p13, %s1188_s13, 3  ;;  %vm411_vm0 = vcmask 31744   ;;  %vm413_vm1 = vcmask 64512   ;;  %v396_v8 = vld [vmem:[%s1483_s3 + $0x38] sm:$0xf] }
  0x21   : > { %408 = vrot.lane.b32.xlu0 %v1230_v2, %s1106_s16  ;;  %v1244_v5 = vld [vmem:[%s1482_s2] sm:$0xff]  ;;  %vm478_vm2 = vcmask 1043456   ;;  %v395_v9 = vld [vmem:[%s1483_s3 + $0x30] sm:$0xff]  ;;  %v394_v10 = vld [vmem:[%s1483_s3 + $0x28] sm:$0xff]  ;;  %vm467_vm3 = vcmask 162816   ;;  %vm469_vm4 = vcmask 326656  }
  0x22   : > { %s955_s21 = sshll.u32 %s384_s17, 3  ;;  %v393_v11 = vld [vmem:[%s1483_s3 + $0x20] sm:$0xff]  ;;  %v392_v12 = vld [vmem:[%s1483_s3 + $0x18] sm:$0xff]  ;;  %v391_v13 = vld [vmem:[%s1483_s3 + $0x10] sm:$0xff]  ;;  %vm474_vm5 = vcmask 490496   ;;  %s1493_s17 = smov 96  }
  0x23   : > { %s386_s24 = scalar_lea.vmem %s1480_s0, %s955_s21  ;;  %v390_v14 = vld [vmem:[%s1483_s3 + $0x8] sm:$0xff]  ;;  %v389_v18 = vld [vmem:[%s1483_s3] sm:$0xff]  ;;  %v404_v43 = vld [vmem:[%s1484_s4 + $0x38] sm:$0xf]  ;;  %vm620_vm10 = vcmask 130048   ;;  %vm704_vm11 = vcmask 261120  }
  0x24   : > { %v1239_v3 = vld [vmem:[%s386_s24] sm:$0xff]  ;;  %v403_v44 = vld [vmem:[%s1484_s4 + $0x30] sm:$0xff]  ;;  %963 = vmatpush.msk.msra.mxu1 %vm478_vm2, %v404_v43  ;;  %v402_v45 = vld [vmem:[%s1484_s4 + $0x28] sm:$0xff]  ;;  %s1500_s24 = scalar_lea.vmem [#allocation2], %s1225_s29  ;;  %vm706_vm12 = vcmask 523264   ;;  %vm711_vm13 = vcmask 785408  }
  0x25   : > { %v1028_v23 = vld [vmem:[%s1485_s5] ss:$0 sm:$0xff]  ;;  %v400_v47 = vld [vmem:[%s1484_s4 + $0x18] sm:$0xff]  ;;  %v399_v48 = vld [vmem:[%s1484_s4 + $0x10] sm:$0xff]  ;;  %s1505_s29 = sand.u32 1, %s1096_s10  }
  0x26   : > { %597 = vmatpush.msra.mxu1 %v403_v44  ;;  %v401_v46 = vld [vmem:[%s1484_s4 + $0x20] sm:$0xff]  ;;  %v398_v49 = vld [vmem:[%s1484_s4 + $0x8] sm:$0xff]  ;;  %s853_s21 = scalar_lea.sflag [#allocation4], %s1505_s29 }
  0x27   : > { %v397_v53 = vld [vmem:[%s1484_s4] sm:$0xff]  ;;  %v1326_v58 = vld [vmem:[%s1500_s24 + $0x8] sm:$0xff]  ;;  %s1501_s24 = smov 96  }
  0x28   : > { %598 = vmatpush.msra.mxu1 %v402_v45 }
  0x2a   : > { %599 = vmatpush.msra.mxu1 %v401_v46 }
  0x2c   : > { %600 = vmatpush.msra.mxu1 %v400_v47  ;;  %v645_v47 = vld [vmem:[%s1487_s7 + $0x58] sm:$0xff] }
  0x2e   : > { %601 = vmatpush.msra.mxu1 %v399_v48  ;;  %v644_v48 = vld [vmem:[%s1487_s7 + $0x50] sm:$0xff] }
  0x30   : > { %602 = vmatpush.msra.mxu1 %v398_v49  ;;  %v643_v49 = vld [vmem:[%s1487_s7 + $0x48] sm:$0xff] }
  0x32   : > { %603 = vmatpush.msra.mxu1 %v397_v53  ;;  %v638_v53 = vld [vmem:[%s1487_s7 + $0x20] sm:$0xff] }
  0x34   : > { %822 = vmatpush.msrb.mxu1 %v645_v47 }
  0x36   : > { %823 = vmatpush.msrb.mxu1 %v644_v48 }
  0x38   : > { %824 = vmatpush.msrb.mxu1 %v643_v49 }
  0x93   : > { %v409_v4 = vpop.permute.xlu0 %408 }
  0x94   : > { %v412_v6 = vsel %vm411_vm0, %v1239_v3, %v409_v4 }
  0x95   : > { %432 = vmatpush.msra.mxu0 %v412_v6 }
  0x96   : > { %956 = vmatmul.msk.f32.vlgmr.msra.gmra.mxu0 %vm413_vm1, %v1244_v5 }
 0x113   : > { %v434_v7 = vpop.f32.mrf.mxu0 }
 0x114   : > { %460 = vrot.lane.b32.xlu0 %v434_v7, %s1492_s27  ;;  %452 = vmatpush.msra.mxu2 %v434_v7  ;;  %s1496_s27 = smov 16  }
 0x115   : > { %957 = vmatmul.msk.f32.vlgmr.msra.gmra.mxu2 %vm413_vm1, %v1244_v5 }
 0x116   : > { %958 = vmatpush.msk.msrb.mxu2 %vm478_vm2, %v396_v8  ;;  %v633_v8 = vld [vmem:[%s1486_s6 + $0x58] sm:$0xff] }
 0x118   : > { %491 = vmatpush.msrb.mxu2 %v395_v9  ;;  %v632_v9 = vld [vmem:[%s1486_s6 + $0x50] sm:$0xff] }
 0x11a   : > { %492 = vmatpush.msrb.mxu2 %v394_v10  ;;  %v631_v10 = vld [vmem:[%s1486_s6 + $0x48] sm:$0xff] }
 0x11c   : > { %493 = vmatpush.msrb.mxu2 %v393_v11  ;;  %579 = vrot.lane.b32.xlu0 %v1028_v23, %s1493_s17  ;;  %v630_v11 = vld [vmem:[%s1486_s6 + $0x40] sm:$0xff]  ;;  %s975_s17 = sshll.u32 %s1188_s13, 3 }
 0x11e   : > { %494 = vmatpush.msrb.mxu2 %v392_v12  ;;  %v629_v12 = vld [vmem:[%s1486_s6 + $0x38] sm:$0xff] }
 0x120   : > { %495 = vmatpush.msrb.mxu2 %v391_v13  ;;  %v628_v13 = vld [vmem:[%s1486_s6 + $0x30] sm:$0xff] }
 0x122   : > { %496 = vmatpush.msrb.mxu2 %v390_v14  ;;  %v627_v14 = vld [vmem:[%s1486_s6 + $0x28] sm:$0xff] }
 0x124   : > { %497 = vmatpush.msrb.mxu2 %v389_v18  ;;  %650 = vrot.lane.b32.xlu0 %v1326_v58, %s1496_s27  ;;  %v623_v18 = vld [vmem:[%s1486_s6 + $0x8] sm:$0xff] }
 0x186   : > { %v461_v19 = vpop.permute.xlu0 %460 }
 0x187   : > { %v468_v20 = vsel %vm467_vm3, %v412_v6, %v461_v19 }
 0x18e   : > { %v580_v59 = vpop.permute.xlu0 %579 }
 0x196   : > { %v651_v4 = vpop.permute.xlu0 %650 }
 0x198   : > { %v454_v15 = vpop.f32.mrf.mxu2 }
 0x199   : > { %v457_v16 = vmul.f32 2.0, %v454_v15  ;;  %v626_v15 = vld [vmem:[%s1486_s6 + $0x20] sm:$0xff] }
 0x19b   : > { %v458_v17 = vsub.f32 %v457_v16, %v412_v6  ;;  %v625_v16 = vld [vmem:[%s1486_s6 + $0x18] sm:$0xff] }
 0x19d   : > { %464 = vrot.lane.b32.xlu1 %v458_v17, %s1108_s28  ;;  %v624_v17 = vld [vmem:[%s1486_s6 + $0x10] sm:$0xff] }
 0x20f   : > { %v465_v21 = vpop.permute.xlu1 %464 }
 0x210   : > { %v470_v22 = vsel %vm469_vm4, %v468_v20, %v465_v21 }
 0x211   : > { %959 = vmatmul.msk.f32.vlgmr.msrb.gmra.mxu2 %vm474_vm5, %v470_v22  ;;  %v622_v22 = vld [vmem:[%s1486_s6] sm:$0xff] }
 0x294   : > { %v499_v24 = vpop.f32.mrf.mxu2 }
 0x295   : > { %v500_v25 = vadd.f32 %v1028_v23, %v499_v24 }
 0x297   : > { %v960_v26 = vmul.f32 -1.442695, %v500_v25 }
 0x299   : > { %1030 = vpow2.f32 %v960_v26 }
 0x29f   : > { %v1031_v27 = vpop.eup %1030 }
 0x2a0   : > { %v505_v28 = vadd.f32 1.0, %v1031_v27  ;;  %v1029_v27 = vld [vmem:[%s1488_s8] ss:$0 sm:$0xff] }
 0x2a2   : > { %1032 = vrcp.f32 %v505_v28  ;;  %v517_v32 = vand.u32 2147483648, %v505_v28  ;;  %v515_v34 = vand.u32 2147483647, %v505_v28  ;;  %vm511_vm7 = vweird.f32 %v505_v28 }
 0x2a4   : > { %v518_v36 = vor.u32 1.1754944e-38, %v517_v32  ;;  %vm516_vm9 = vcmp.eq.f32.partialorder %v515_v34, 8.507059e+37 }
 0x2a8   : > { %v1033_v29 = vpop.eup %1032 }
 0x2a9   : > { %v507_v30 = vmul.f32 %v1033_v29, %v505_v28  ;;  %vm512_vm6 = vweird.f32 %v1033_v29 }
 0x2aa   : > { %vm513_vm8 = vmor %vm511_vm7, %vm512_vm6 }
 0x2ab   : > { %v508_v31 = vsub.f32 1.0, %v507_v30 }
 0x2ad   : > { %v509_v33 = vmul.f32 %v1033_v29, %v508_v31 }
 0x2af   : > { %v510_v35 = vadd.f32 %v1033_v29, %v509_v33 }
 0x2b1   : > { %v514_v37 = vsel %vm513_vm8, %v1033_v29, %v510_v35 }
 0x2b2   : > { %v519_v38 = vsel %vm516_vm9, %v518_v36, %v514_v37 }
 0x2b3   : > { %v521_v39 = vmul.f32 %v519_v38, %v1230_v2 }
 0x2b5   : > { %523 = vrot.lane.b32.xlu1 %v521_v39, %s1106_s16  ;;  %s1113_s16 = smov 64  }
 0x327   : > { %v524_v40 = vpop.permute.xlu1 %523 }
 0x328   : > { %v526_v41 = vsel %vm411_vm0, %v1239_v3, %v524_v40 }
 0x329   : > { %542 = vmatpush.msra.mxu3 %v526_v41 }
 0x32a   : > { %961 = vmatmul.msk.f32.vlgmr.msra.gmra.mxu3 %vm413_vm1, %v1244_v5 }
 0x3ad   : > { %v544_v42 = vpop.f32.mrf.mxu3 }
 0x3ae   : > { %570 = vrot.lane.b32.xlu2 %v544_v42, %s1499_s26  ;;  %562 = vmatpush.msrb.mxu0 %v544_v42  ;;  %s1495_s26 = smov 32  }
 0x3af   : > { %962 = vmatmul.msk.f32.vlgmr.msrb.gmra.mxu0 %vm413_vm1, %v1244_v5 }
 0x408   : > { %v571_v54 = vpop.permute.xlu2 %570 }
 0x409   : > { %v577_v55 = vsel %vm467_vm3, %v526_v41, %v571_v54  ;;  %v637_v54 = vld [vmem:[%s1487_s7 + $0x18] sm:$0xff] }
 0x42c   : > { %v564_v50 = vpop.f32.mrf.mxu0 }
 0x42d   : > { %v567_v51 = vmul.f32 2.0, %v564_v50  ;;  %v642_v50 = vld [vmem:[%s1487_s7 + $0x40] sm:$0xff] }
 0x42e   : > { %825 = vmatpush.msrb.mxu1 %v642_v50 }
 0x42f   : > { %v568_v52 = vsub.f32 %v567_v51, %v526_v41  ;;  %v640_v51 = vld [vmem:[%s1487_s7 + $0x30] sm:$0xff] }
 0x431   : > { %574 = vrot.lane.b32.xlu2 %v568_v52, %s1108_s28  ;;  %s1494_s28 = smov 112   ;;  %v639_v52 = vld [vmem:[%s1487_s7 + $0x28] sm:$0xff] }
 0x48b   : > { %v575_v56 = vpop.permute.xlu2 %574 }
 0x48c   : > { %v578_v57 = vsel %vm469_vm4, %v577_v55, %v575_v56  ;;  %v636_v55 = vld [vmem:[%s1487_s7 + $0x10] sm:$0xff]  ;;  %v635_v56 = vld [vmem:[%s1487_s7 + $0x8] sm:$0xff] }
 0x48d   : > { %964 = vmatmul.msk.f32.vlgmr.msra.gmra.mxu1 %vm474_vm5, %v578_v57 }
 0x50a   : > { %v605_v60 = vpop.f32.mrf.mxu1 }
 0x50b   : > { %v606_v61 = vadd.f32 %v605_v60, %v580_v59 }
 0x50d   : > { %1034 = vtanh.f32 %v606_v61  ;;  %v634_v61 = vld [vmem:[%s1487_s7] sm:$0xff] }
 0x513   : > { %v1035_v62 = vpop.eup %1034 }
 0x514   : > { %v609_v63 = vsub.f32 %v1230_v2, %v1035_v62 }
 0x516   : > { %611 = vrot.lane.b32.xlu1 %v609_v63, %s1496_s27 }
 0x588   : > { %v612_v0 = vpop.permute.xlu1 %611 }
 0x589   : > { %v614_v1 = vmul.f32 %v612_v0, %v519_v38 }
 0x58b   : > { %616 = vrot.lane.b32.xlu2 %v614_v1, %s1494_s28  ;;  %s1502_s28 = smov 32  }
 0x5e5   : > { %v617_v3 = vpop.permute.xlu2 %616 }
 0x5e6   : > { %v1333_v6 = vadd.f32 %v1035_v62, %v617_v3 }
 0x5e8   : > { %621 = vst.msk [vmem:[%s1336_s25] sm:$0xff] %vm620_vm10, %v1333_v6  ;;  %v653_v2 = vsel %vm620_vm10, %v1333_v6, %v651_v4 }
 0x5e9   : > { %669 = vmatpush.msrb.mxu3 %v653_v2 }
 0x5ea   : > { %966 = vmatmul.msk.f32.vlgmr.msrb.gmra.mxu3 %vm413_vm1, %v1244_v5 }
 0x5eb   : > { %719 = vmatpush.msra.mxu3 %v633_v8 }
 0x5ed   : > { %720 = vmatpush.msra.mxu3 %v632_v9 }
 0x5ef   : > { %721 = vmatpush.msra.mxu3 %v631_v10 }
 0x5f1   : > { %722 = vmatpush.msra.mxu3 %v630_v11 }
 0x5f3   : > { %723 = vmatpush.msra.mxu3 %v629_v12 }
 0x5f5   : > { %724 = vmatpush.msra.mxu3 %v628_v13 }
 0x5f7   : > { %725 = vmatpush.msra.mxu3 %v627_v14 }
 0x5f9   : > { %726 = vmatpush.msra.mxu3 %v626_v15 }
 0x5fb   : > { %727 = vmatpush.msra.mxu3 %v625_v16 }
 0x5fd   : > { %728 = vmatpush.msra.mxu3 %v624_v17 }
 0x5ff   : > { %729 = vmatpush.msra.mxu3 %v623_v18 }
 0x601   : > { %730 = vmatpush.msra.mxu3 %v622_v22 }
 0x66d   : > { %v671_v7 = vpop.f32.mrf.mxu3 }
 0x66e   : > { %697 = vrot.lane.b32.xlu1 %v671_v7, %s1495_s26  ;;  %689 = vmatpush.msra.mxu0 %v671_v7 }
 0x66f   : > { %967 = vmatmul.msk.f32.vlgmr.msra.gmra.mxu0 %vm413_vm1, %v1244_v5 }
 0x6e0   : > { %v698_v23 = vpop.permute.xlu1 %697 }
 0x6e1   : > { %v705_v24 = vsel %vm704_vm11, %v653_v2, %v698_v23 }
 0x6ec   : > { %v691_v19 = vpop.f32.mrf.mxu0 }
 0x6ed   : > { %v694_v20 = vmul.f32 2.0, %v691_v19 }
 0x6ef   : > { %v695_v21 = vsub.f32 %v694_v20, %v653_v2 }
 0x6f1   : > { %701 = vrot.lane.b32.xlu2 %v695_v21, %s1113_s16 }
 0x74b   : > { %v702_v25 = vpop.permute.xlu2 %701 }
 0x74c   : > { %v707_v26 = vsel %vm706_vm12, %v705_v24, %v702_v25 }
 0x74d   : > { %968 = vmatmul.msk.f32.vlgmr.msra.gmra.mxu3 %vm711_vm13, %v707_v26 }
 0x7d0   : > { %v732_v28 = vpop.f32.mrf.mxu3 }
 0x7d1   : > { %v733_v29 = vadd.f32 %v1029_v27, %v732_v28 }
 0x7d3   : > { %v969_v30 = vmul.f32 -1.442695, %v733_v29 }
 0x7d5   : > { %1036 = vpow2.f32 %v969_v30 }
 0x7db   : > { %v1037_v31 = vpop.eup %1036 }
 0x7dc   : > { %v738_v32 = vadd.f32 1.0, %v1037_v31 }
 0x7de   : > { %1038 = vrcp.f32 %v738_v32  ;;  %v750_v36 = vand.u32 2147483648, %v738_v32  ;;  %v748_v38 = vand.u32 2147483647, %v738_v32  ;;  %vm744_vm15 = vweird.f32 %v738_v32 }
 0x7e0   : > { %v751_v40 = vor.u32 1.1754944e-38, %v750_v36  ;;  %vm749_vm2 = vcmp.eq.f32.partialorder %v748_v38, 8.507059e+37 }
 0x7e4   : > { %v1039_v33 = vpop.eup %1038 }
 0x7e5   : > { %v740_v34 = vmul.f32 %v1039_v33, %v738_v32  ;;  %vm745_vm14 = vweird.f32 %v1039_v33 }
 0x7e6   : > { %vm746_vm0 = vmor %vm744_vm15, %vm745_vm14 }
 0x7e7   : > { %v741_v35 = vsub.f32 1.0, %v740_v34 }
 0x7e9   : > { %v742_v37 = vmul.f32 %v1039_v33, %v741_v35 }
 0x7eb   : > { %v743_v39 = vadd.f32 %v1039_v33, %v742_v37 }
 0x7ed   : > { %v747_v41 = vsel %vm746_vm0, %v1039_v33, %v743_v39 }
 0x7ee   : > { %v752_v42 = vsel %vm749_vm2, %v751_v40, %v747_v41 }
 0x7ef   : > { %v754_v43 = vmul.f32 %v1326_v58, %v752_v42 }
 0x7f1   : > { %756 = vrot.lane.b32.xlu0 %v754_v43, %s1496_s27  ;;  %s863_s27 = scalar_lea.hbm %s1489_s9, %s975_s17  ;;  %s1062_s17 = scalar_lea.hbm %s1489_s9, 64 }
 0x7f2   : > { %s866_s26 = sshll.u32 %s863_s27, 4  ;;  %s867_s26 = int_to_ptr.hbm [resolvable:$true] %s866_s26 }
 0x7f3   : > { %s1056_s22 = sshra.s32 %s867_s26, 4  ;;  %s1057_s22 = int_to_ptr.hbm [resolvable:$true] %s1056_s22 }
 0x7f4   : > { %p1063_p3 = scmp.lt.s32.totalorder %s1057_s22, %s1489_s9 }
 0x7f9   : > { %812 = vrot.lane.b32.xlu0 %v1029_v27, %s1501_s24 }
 0x863   : > { %v757_v44 = vpop.permute.xlu0 %756 }
 0x864   : > { %v759_v45 = vsel %vm620_vm10, %v1333_v6, %v757_v44 }
 0x865   : > { %775 = vmatpush.msra.mxu2 %v759_v45 }
 0x866   : > { %970 = vmatmul.msk.f32.vlgmr.msra.gmra.mxu2 %vm413_vm1, %v1244_v5 }
 0x86b   : > { %v813_v3 = vpop.permute.xlu0 %812 }
 0x8e9   : > { %v777_v46 = vpop.f32.mrf.mxu2 }
 0x8ea   : > { %803 = vrot.lane.b32.xlu1 %v777_v46, %s1502_s28  ;;  %795 = vmatpush.msrb.mxu0 %v777_v46  ;;  %s864_s28 = sshll.u32 %s1336_s25, 4  ;;  %s865_s28 = int_to_ptr.vmem [resolvable:$true] %s864_s28 }
 0x8eb   : > { %971 = vmatmul.msk.f32.vlgmr.msrb.gmra.mxu0 %vm413_vm1, %v1244_v5  ;;  %v641_v5 = vld [vmem:[%s1487_s7 + $0x38] sm:$0xff] }
 0x8ec   : > { %826 = vmatpush.msrb.mxu1 %v641_v5 }
 0x8ee   : > { %827 = vmatpush.msrb.mxu1 %v640_v51 }
 0x8f0   : > { %828 = vmatpush.msrb.mxu1 %v639_v52 }
 0x8f2   : > { %829 = vmatpush.msrb.mxu1 %v638_v53 }
 0x8f4   : > { %830 = vmatpush.msrb.mxu1 %v637_v54 }
 0x8f6   : > { %831 = vmatpush.msrb.mxu1 %v636_v55 }
 0x8f8   : > { %832 = vmatpush.msrb.mxu1 %v635_v56 }
 0x8fa   : > { %833 = vmatpush.msrb.mxu1 %v634_v61 }
 0x95c   : > { %v804_v62 = vpop.permute.xlu1 %803 }
 0x95d   : > { %v810_v63 = vsel %vm704_vm11, %v759_v45, %v804_v62 }
 0x968   : > { %v797_v57 = vpop.f32.mrf.mxu0 }
 0x969   : > { %v800_v59 = vmul.f32 2.0, %v797_v57 }
 0x96b   : > { %v801_v60 = vsub.f32 %v800_v59, %v759_v45 }
 0x96d   : > { %807 = vrot.lane.b32.xlu2 %v801_v60, %s1113_s16  ;;  %s1503_s16 = smov 16  }
 0x9c7   : > { %v808_v0 = vpop.permute.xlu2 %807 }
 0x9c8   : > { %v811_v1 = vsel %vm706_vm12, %v810_v63, %v808_v0 }
 0x9c9   : > { %972 = vmatmul.msk.f32.vlgmr.msrb.gmra.mxu1 %vm711_vm13, %v811_v1 }
 0xa46   : > { %v835_v4 = vpop.f32.mrf.mxu1 }
 0xa47   : > { %v836_v6 = vadd.f32 %v835_v4, %v813_v3 }
 0xa49   : > { %1040 = vtanh.f32 %v836_v6 }
 0xa4f   : > { %v1041_v2 = vpop.eup %1040 }
 0xa50   : > { %v839_v7 = vsub.f32 %v1326_v58, %v1041_v2 }
 0xa52   : > { %841 = vrot.lane.b32.xlu1 %v839_v7, %s1503_s16  ;;  %s1058_s16 = scalar_lea.hbm %s1057_s22, 16 }
 0xa53   : > { %p1059_p0 = scmp.ne.s32.totalorder %s1057_s22, %s1058_s16  ;;  %p1064_p4 = scmp.lt.s32.totalorder %s1062_s17, %s1058_s16 }
 0xa55   : > { %p1060_p1 = pnand %p1059_p0, %p1206_p6  ;;  %p1065_p5 = por %p1064_p4, %p1063_p3 }
 0xa57   : > { %p1061_p2 = pneg %p1060_p1 }
 0xa59   : > { %p1066_p7 = pnand %p1065_p5, %p1061_p2 }
 0xac4   : > { %v842_v8 = vpop.permute.xlu1 %841 }
 0xac5   : > { %v844_v9 = vmul.f32 %v842_v8, %v752_v42 }
 0xac7   : > { %846 = vrot.lane.b32.xlu2 %v844_v9, %s1504_s23 }
 0xb21   : > { %v847_v10 = vpop.permute.xlu2 %846 }
 0xb22   : > { %v849_v11 = vadd.f32 %v1041_v2, %v847_v10 }
 0xb24   : > { %973 = vst.msk [vmem:[%s1336_s25 + $0x8] sm:$0xff] %vm620_vm10, %v849_v11 }
 0xb25   : > { %1069 = shalt.err (!%p1066_p7)
}
 0xb26   : > { %s1114_s25 = smov 128   ;;  %s1115_s27 = smov 512  }
 0xb27   : > { %s1116_s29 = smov 8  }
 0xb28   : > { %978 = dma.vmem_to_hbm [thread:$0]  (%p1206_p6), %s865_s28, 256, %s867_s26, %s853_s21, %s1114_s25, %s1115_s27, %s1116_s29  }
 0xb29 PF: > { %p984_p9 = scmp.ge.s32.totalorder %s1104_s12, 2  ;;  %s881_s13 = sand.u32 1, %s1092_s30  }
 0xb2a   : > { %s882_s22 = scalar_lea.sflag [#allocation4], %s881_s13 }
 0xb2b   : > { %p981_p10 = pnand %p984_p9, %p1210_p8 }
 0xb2d   : > { %p982_p11 = pneg %p981_p10 }
 0xb2f   : > { %1087 = dma.done.wait (%p982_p11), %s882_s22, 256  }
 0xb30   : > { %1089 = vsyncadd (%p982_p11), %s882_s22, 4294967040  ;;  %p19_p12 = scmp.ge.s32.totalorder %s1192_s15, 6   ;;  %s1506_s30 = smov %s1096_s10 }
 0xb31   : > { %s1507_s10 = smov %s1100_s11  ;;  %s1508_s11 = smov %s1204_s18 }
 0xb32   : > { %s1509_s12 = smov %s1192_s15  ;;  %21 = sbr.rel (!%p19_p12) target bundleno = 3 (0x3), region = 139 }
 0xb37   :  { %888 = vsyncpa [#allocation4], 1 }
 0xb38   :  { %890 = vsyncpa [#allocation4 + $0x1], 1 }

</bundles_post_ra>
